<compile_context>
chip_gen: v7x
topology: tpu7x:2x2x1
jax: 0.10.0
libtpu: 0.0.40
codegen_flags: <defaults>
</compile_context>

<pallas_src>
import jax
import jax.numpy as jnp
from jax import lax
from jax.experimental import pallas as pl
from jax.experimental.pallas import tpu as pltpu


# -----------------------------------------------------------------------------
# Pallas kernel 1: fused relation-MLP + head_bn + ComplEx mixing + score_bn
# -----------------------------------------------------------------------------
def relation_score_kernel(bn_ref, ctx_ref, w1t_ref, b1_ref, w2t_ref, head_ref,
                          out_ref):
    # relation = relu(ctx @ W1^T + b1) @ W2^T           (weights pre-transposed)
    h = jnp.dot(ctx_ref[...], w1t_ref[...], preferred_element_type=jnp.float32)
    h = jnp.maximum(h + b1_ref[...], 0.0)
    rel = jnp.dot(h, w2t_ref[...], preferred_element_type=jnp.float32)  # (B, 2dc)

    dc = rel.shape[1] // 2
    head = head_ref[...]
    # head_bn (eval mode, folded into per-channel scale/shift).
    # TODO(synk): training-mode BatchNorm batch statistics are not reproduced;
    # frozen running stats (eval semantics) are used instead.
    re_h = head[:, :dc] * bn_ref[0, 0] + bn_ref[1, 0]
    im_h = head[:, dc:] * bn_ref[0, 1] + bn_ref[1, 1]
    re_r = rel[:, :dc]
    im_r = rel[:, dc:]
    # ComplEx mixing + score_bn (eval mode, folded).
    re_s = (re_h * re_r - im_h * im_r) * bn_ref[2, 0] + bn_ref[3, 0]
    im_s = (re_h * im_r + im_h * re_r) * bn_ref[2, 1] + bn_ref[3, 1]
    out_ref[...] = jnp.concatenate([re_s, im_s], axis=1)


def relation_score(ctx, head, bn_params, w1t, b1_2d, w2t):
    """ctx:(B,2H)  head:(B,2dc)  bn:(4,2)  w1t:(2H,FC)  b1_2d:(1,FC)  w2t:(FC,2dc)."""
    B, in_dim = ctx.shape
    fc_hidden = w1t.shape[1]
    rel_dim = w2t.shape[1]
    return pl.pallas_call(
        relation_score_kernel,
        out_shape=jax.ShapeDtypeStruct((B, rel_dim), jnp.float32),
        grid=(1,),
        in_specs=[
            pl.BlockSpec(memory_space=pltpu.MemorySpace.SMEM),      # bn (4,2)
            pl.BlockSpec((B, in_dim), lambda i: (0, 0)),            # ctx
            pl.BlockSpec((in_dim, fc_hidden), lambda i: (0, 0)),    # W1^T
            pl.BlockSpec((1, fc_hidden), lambda i: (0, 0)),         # b1
            pl.BlockSpec((fc_hidden, rel_dim), lambda i: (0, 0)),   # W2^T
            pl.BlockSpec((B, rel_dim), lambda i: (0, 0)),           # head emb
        ],
        out_specs=pl.BlockSpec((B, rel_dim), lambda i: (0, 0)),
    )(bn_params, ctx, w1t, b1_2d, w2t, head)


# -----------------------------------------------------------------------------
# Pallas kernel 2: entity sweep — logits + stable BCE(sum), tiled over entities
# -----------------------------------------------------------------------------
def complex_bce_loss(score, table_t_bf16, targets, *, tile_n=512, n_split=2):
    """score:(B, 2dc) f32 ; table_t_bf16:(2dc, N) bf16 ; targets:(B, N)."""
    B, dc2 = score.shape
    _, N = table_t_bf16.shape

    unit = tile_n * n_split
    n_pad = ((N + unit - 1) // unit) * unit
    n_tiles = n_pad // (tile_n * n_split)         # tiles per split
    need_mask = (n_pad != N)

    targets = targets.astype(jnp.bfloat16)        # exact for 0/1 labels
    if need_mask:
        table_t_bf16 = jnp.pad(table_t_bf16, ((0, 0), (0, n_pad - N)))
        targets = jnp.pad(targets, ((0, 0), (0, n_pad - N)))

    def kernel(score_ref, table_ref, tgt_ref, loss_ref, acc_ref):
        c = pl.program_id(0)
        j = pl.program_id(1)

        @pl.when(j == 0)
        def _():
            acc_ref[...] = jnp.zeros_like(acc_ref)
            loss_ref[...] = jnp.zeros_like(loss_ref)

        # Lane-dense, transpose-free MXU feed: (B,2dc) @ (2dc,tile_n).
        s_bf = score_ref[...].astype(jnp.bfloat16)
        x = jnp.dot(s_bf, table_ref[...],
                    preferred_element_type=jnp.float32)          # (B, tile_n)
        t = tgt_ref[...].astype(jnp.float32)

        # Numerically stable BCE-with-logits: max(x,0) - t*x + log(1+exp(-|x|))
        bce = jnp.maximum(x, 0.0) - t * x + jnp.log(1.0 + jnp.exp(-jnp.abs(x)))

        if need_mask:
            col = ((c * n_tiles + j) * tile_n
                   + lax.broadcasted_iota(jnp.int32, (1, tile_n), 1))
            bce = jnp.where(col < N, bce, 0.0)

        acc_ref[...] += bce                                       # VPU only

        @pl.when(j == pl.num_programs(1) - 1)
        def _():
            total = jnp.sum(jnp.sum(acc_ref[...], axis=1, keepdims=True),
                            axis=0, keepdims=True)                # (1,1)
            loss_ref[...] = total.reshape(1, 1, 1)

    out = pl.pallas_call(
        kernel,
        out_shape=jax.ShapeDtypeStruct((n_split, 1, 1), jnp.float32),
        grid=(n_split, n_tiles),
        in_specs=[
            pl.BlockSpec((B, dc2), lambda c, j: (0, 0)),                   # score (resident)
            pl.BlockSpec((dc2, tile_n), lambda c, j: (0, c * n_tiles + j)),  # tails (bf16)
            pl.BlockSpec((B, tile_n), lambda c, j: (0, c * n_tiles + j)),    # targets (bf16)
        ],
        out_specs=pl.BlockSpec((1, 1, 1), lambda c, j: (c, 0, 0)),
        scratch_shapes=[pltpu.VMEM((B, tile_n), jnp.float32)],
        compiler_params=pltpu.CompilerParams(
            dimension_semantics=("parallel", "arbitrary")),
    )(score, table_t_bf16, targets)
    return jnp.sum(out)


# -----------------------------------------------------------------------------
# Plain-JAX glue: BiLSTM with packed-sequence semantics, attention layer
# -----------------------------------------------------------------------------
def lstm_direction(x_sbd, lengths, w_ih, w_hh, b_ih, b_hh, reverse):
    """Emulates pack_padded_sequence + nn.LSTM for one direction.

    x_sbd: (S, B, D).  Positions t >= length are never 'seen' (hidden/cell are
    reset to zero there), and their outputs are 0 (pad_packed padding_value)."""
    S, B, _ = x_sbd.shape
    H = w_hh.shape[1]
    ts = jnp.arange(S)
    xs = x_sbd
    if reverse:
        xs = xs[::-1]
        ts = ts[::-1]

    def cell(carry, inp):
        h, c = carry
        x_t, t = inp
        gates = x_t @ w_ih.T + b_ih + h @ w_hh.T + b_hh
        i, f, g, o = jnp.split(gates, 4, axis=-1)
        i = jax.nn.sigmoid(i)
        f = jax.nn.sigmoid(f)
        g = jnp.tanh(g)
        o = jax.nn.sigmoid(o)
        c_new = f * c + i * g
        h_new = o * jnp.tanh(c_new)
        valid = (t < lengths)[:, None]
        h_new = jnp.where(valid, h_new, 0.0)
        c_new = jnp.where(valid, c_new, 0.0)
        return (h_new, c_new), h_new

    init = (jnp.zeros((B, H), jnp.float32), jnp.zeros((B, H), jnp.float32))
    _, hs = lax.scan(cell, init, (xs, ts))
    if reverse:
        hs = hs[::-1]
    return hs  # (S, B, H)


def attention_layer(out_sbd, lengths, wa, ba, va):
    # TODO(synk): exact Attention_layer source is not included in the module;
    # a standard additive attention (score = v^T tanh(W h_t + b), softmax over
    # valid timesteps, weighted sum) with hidden_dim=2H, attention_dim=4H is used.
    S = out_sbd.shape[0]
    e = jnp.tanh(jnp.einsum('sbd,ad->sba', out_sbd, wa) + ba)   # (S, B, A)
    scores = jnp.einsum('sba,a->sb', e, va)                     # (S, B)
    mask = jnp.arange(S)[:, None] < lengths[None, :]
    scores = jnp.where(mask, scores, -1e9)
    alpha = jax.nn.softmax(scores, axis=0)
    return jnp.einsum('sb,sbd->bd', alpha, out_sbd)             # (B, 2H)


def answer_filtering_forward(params, question, questions_length, head_entity,
                             tail_entity, max_sent_len):
    assert question.shape[1] == max_sent_len
    emb = params['word_emb'][question]                 # (B, S, word_dim)
    x_sbd = jnp.transpose(emb, (1, 0, 2))              # (S, B, D)
    h_f = lstm_direction(x_sbd, questions_length, params['w_ih_f'],
                         params['w_hh_f'], params['b_ih_f'], params['b_hh_f'],
                         reverse=False)
    h_b = lstm_direction(x_sbd, questions_length, params['w_ih_b'],
                         params['w_hh_b'], params['b_ih_b'], params['b_hh_b'],
                         reverse=True)
    out = jnp.concatenate([h_f, h_b], axis=-1)         # (S, B, 2H)
    ctx = attention_layer(out, questions_length, params['att_w'],
                          params['att_b'], params['att_v'])
    head = params['entity_emb'][head_entity]           # (B, 2dc), f32 lookup
    score = relation_score(ctx, head, params['bn_scale_shift'],
                           params['fc1_wT'], params['fc1_b2d'],
                           params['fc2_wT'])           # Pallas kernel 1
    loss = complex_bce_loss(score, params['entity_table_T'], tail_entity,
                            tile_n=512, n_split=2)     # Pallas kernel 2
    return loss


# -----------------------------------------------------------------------------
# Pure-JAX reference of the Pallas-kernelized stages (for validation).
# Mirrors the kernel's bf16 streaming precision of the frozen entity table and
# the numerically stable BCE-with-logits form (mathematically equal to
# sigmoid + BCELoss(reduction='sum') of the PyTorch module).
# -----------------------------------------------------------------------------
def forward_reference(params, question, questions_length, head_entity,
                      tail_entity):
    emb = params['word_emb'][question]
    x_sbd = jnp.transpose(emb, (1, 0, 2))
    h_f = lstm_direction(x_sbd, questions_length, params['w_ih_f'],
                         params['w_hh_f'], params['b_ih_f'], params['b_hh_f'],
                         reverse=False)
    h_b = lstm_direction(x_sbd, questions_length, params['w_ih_b'],
                         params['w_hh_b'], params['b_ih_b'], params['b_hh_b'],
                         reverse=True)
    out = jnp.concatenate([h_f, h_b], axis=-1)
    ctx = attention_layer(out, questions_length, params['att_w'],
                          params['att_b'], params['att_v'])
    h = jnp.maximum(ctx @ params['fc1_wT'] + params['fc1_b2d'], 0.0)
    rel = h @ params['fc2_wT']
    head = params['entity_emb'][head_entity]
    bn = params['bn_scale_shift']
    dc = rel.shape[1] // 2
    re_h = head[:, :dc] * bn[0, 0] + bn[1, 0]
    im_h = head[:, dc:] * bn[0, 1] + bn[1, 1]
    re_r, im_r = rel[:, :dc], rel[:, dc:]
    re_s = (re_h * re_r - im_h * im_r) * bn[2, 0] + bn[3, 0]
    im_s = (re_h * im_r + im_h * re_r) * bn[2, 1] + bn[3, 1]
    score = jnp.concatenate([re_s, im_s], axis=1)
    score_bf = score.astype(jnp.bfloat16).astype(jnp.float32)
    table = params['entity_table_T'].astype(jnp.float32)      # (2dc, N)
    x = score_bf @ table                                       # logits (B, N)
    t = tail_entity.astype(jnp.float32)
    bce = jnp.maximum(x, 0.0) - t * x + jnp.log(1.0 + jnp.exp(-jnp.abs(x)))
    return jnp.sum(bce)


# -----------------------------------------------------------------------------
# Deterministic parameter construction + driver
# -----------------------------------------------------------------------------
def bn_fold(w, b, m, v, eps=1e-5):
    scale = w / jnp.sqrt(v + eps)
    return scale, b - m * scale


def xavier(key, shape):
    fan_out, fan_in = shape
    std = (2.0 / (fan_in + fan_out)) ** 0.5
    return std * jax.random.normal(key, shape, jnp.float32)


if __name__ == "__main__":
    # Small but consistent shapes (the original docstring dims 400/256/200 are
    # internally inconsistent; here embedding_dim = 2*relation_dim and
    # word_dim = LSTM input dim so every op type-checks).
    B, S = 2, 8                      # batch, max_sent_len
    VOCAB, WORD_DIM = 50, 32         # word embedding
    HIDDEN = 16                      # LSTM hidden (BiLSTM -> 2H = 32)
    ATT_DIM = 4 * HIDDEN             # attention_dim
    FC_HIDDEN = 32                   # fc_hidden_dim
    REL_HALF = 16                    # relation_dim param; self.relation_dim = 32
    EMBED_DIM = 2 * REL_HALF         # entity embedding dim = 32
    N_ENT = 2500                     # entity vocabulary (exercises pad+mask path)

    key = jax.random.PRNGKey(0)
    ks = jax.random.split(key, 20)

    params = {
        'word_emb': 0.2 * jax.random.normal(ks[0], (VOCAB, WORD_DIM), jnp.float32),
        'entity_emb': 0.1 * jax.random.normal(ks[1], (N_ENT, EMBED_DIM), jnp.float32),
        # BiLSTM (PyTorch gate order i, f, g, o)
        'w_ih_f': xavier(ks[2], (4 * HIDDEN, WORD_DIM)),
        'w_hh_f': xavier(ks[3], (4 * HIDDEN, HIDDEN)),
        'b_ih_f': 0.01 * jax.random.normal(ks[4], (4 * HIDDEN,), jnp.float32),
        'b_hh_f': 0.01 * jax.random.normal(ks[5], (4 * HIDDEN,), jnp.float32),
        'w_ih_b': xavier(ks[6], (4 * HIDDEN, WORD_DIM)),
        'w_hh_b': xavier(ks[7], (4 * HIDDEN, HIDDEN)),
        'b_ih_b': 0.01 * jax.random.normal(ks[8], (4 * HIDDEN,), jnp.float32),
        'b_hh_b': 0.01 * jax.random.normal(ks[9], (4 * HIDDEN,), jnp.float32),
        # attention
        'att_w': xavier(ks[10], (ATT_DIM, 2 * HIDDEN)),
        'att_b': jnp.zeros((ATT_DIM,), jnp.float32),
        'att_v': xavier(ks[11], (1, ATT_DIM))[0],
    }
    # fc_lstm2hidden / fc_hidden2relation — stored pre-transposed (once).
    fc1_w = xavier(ks[12], (FC_HIDDEN, 2 * HIDDEN))
    fc2_w = xavier(ks[13], (2 * REL_HALF, FC_HIDDEN))
    params['fc1_wT'] = fc1_w.T                                  # (2H, FC)
    params['fc1_b2d'] = jnp.zeros((1, FC_HIDDEN), jnp.float32)  # (1, FC)
    params['fc2_wT'] = fc2_w.T                                  # (FC, 2dc)

    # Frozen ComplEx tail table, stored once as a (2dc, N) bf16 slab so the
    # scorer streams it transpose-free / lane-dense / half the bytes.
    params['entity_table_T'] = params['entity_emb'].T.astype(jnp.bfloat16)

    # head_bn / score_bn (2 channels each), deterministic "loaded" stats.
    h_scale, h_shift = bn_fold(jnp.array([1.1, 0.9]), jnp.array([0.05, -0.05]),
                               jnp.array([0.02, -0.01]), jnp.array([0.9, 1.1]))
    s_scale, s_shift = bn_fold(jnp.array([0.95, 1.05]), jnp.array([-0.02, 0.03]),
                               jnp.array([0.01, 0.00]), jnp.array([1.2, 0.8]))
    params['bn_scale_shift'] = jnp.stack(
        [h_scale, h_shift, s_scale, s_shift], axis=0).astype(jnp.float32)

    # Inputs (lengths sorted descending, matching pack_padded_sequence).
    question = jax.random.randint(ks[14], (B, S), 1, VOCAB).astype(jnp.int32)
    questions_length = jnp.array([8, 5], jnp.int32)
    head_entity = jnp.array([3, 17], jnp.int32)
    # 0/1 targets stored in bf16 (exact) — halves the streamed target bytes.
    tail_entity = (jax.random.uniform(ks[15], (B, N_ENT)) < 0.05).astype(jnp.bfloat16)

    fwd = jax.jit(answer_filtering_forward, static_argnames=('max_sent_len',))
    loss = fwd(params, question, questions_length, head_entity, tail_entity,
               max_sent_len=S)
    loss = jax.block_until_ready(loss)

    loss_ref = jax.block_until_ready(
        forward_reference(params, question, questions_length, head_entity,
                          tail_entity))

    if not bool(jnp.allclose(loss, loss_ref, rtol=1e-3, atol=1e-2)):
        raise AssertionError(f"mismatch: pallas={loss} ref={loss_ref}")

    print("KERNEL_OK")
</pallas_src>

<mosaic_0001>
module attributes {stable_mosaic.version = 11 : i64} {
  func.func @relation_score_kernel(%arg0: i32, %arg1: memref<4x2xf32, #tpu.memory_space<smem>>, %arg2: memref<2x32xf32, #tpu.memory_space<vmem>>, %arg3: memref<32x32xf32, #tpu.memory_space<vmem>>, %arg4: memref<1x32xf32, #tpu.memory_space<vmem>>, %arg5: memref<32x32xf32, #tpu.memory_space<vmem>>, %arg6: memref<2x32xf32, #tpu.memory_space<vmem>>, %arg7: memref<2x32xf32, #tpu.memory_space<vmem>>) attributes {dimension_semantics = [#tpu.dimension_semantics<arbitrary>], iteration_bounds = array<i64: 1>, scalar_prefetch = 0 : i64, scratch_operands = 0 : i64, tpu.core_type = #tpu.core_type<tc>, window_params = [{transform_indices = @transform_0, window_bounds = array<i64: 4, 2>}, {pipeline_mode = #tpu.pipeline_mode<synchronous>, transform_indices = @transform_1, window_bounds = array<i64: 2, 32>}, {pipeline_mode = #tpu.pipeline_mode<synchronous>, transform_indices = @transform_2, window_bounds = array<i64: 32, 32>}, {pipeline_mode = #tpu.pipeline_mode<synchronous>, transform_indices = @transform_3, window_bounds = array<i64: 1, 32>}, {pipeline_mode = #tpu.pipeline_mode<synchronous>, transform_indices = @transform_4, window_bounds = array<i64: 32, 32>}, {pipeline_mode = #tpu.pipeline_mode<synchronous>, transform_indices = @transform_5, window_bounds = array<i64: 2, 32>}, {pipeline_mode = #tpu.pipeline_mode<synchronous>, transform_indices = @transform_6, window_bounds = array<i64: 2, 32>}]} {
    %c0 = arith.constant 0 : index
    %c0_0 = arith.constant 0 : index
    %0 = vector.load %arg2[%c0, %c0_0] : memref<2x32xf32, #tpu.memory_space<vmem>>, vector<2x32xf32>
    %c0_1 = arith.constant 0 : index
    %c0_2 = arith.constant 0 : index
    %1 = vector.load %arg3[%c0_1, %c0_2] : memref<32x32xf32, #tpu.memory_space<vmem>>, vector<32x32xf32>
    %cst = arith.constant dense<0.000000e+00> : vector<2x32xf32>
    %2 = tpu.matmul %0, %1, %cst {dimension_numbers = #tpu.dot_dimension_numbers<[1], [0], [0], [1], [0, 0, 1, 1], [], []>} : vector<2x32xf32>, vector<32x32xf32>, vector<2x32xf32> -> vector<2x32xf32>
    %c0_3 = arith.constant 0 : index
    %c0_4 = arith.constant 0 : index
    %3 = vector.load %arg4[%c0_3, %c0_4] : memref<1x32xf32, #tpu.memory_space<vmem>>, vector<1x32xf32>
    %4 = vector.broadcast %3 : vector<1x32xf32> to vector<2x32xf32>
    %5 = arith.addf %2, %4 : vector<2x32xf32>
    %cst_5 = arith.constant 0.000000e+00 : f32
    %6 = vector.broadcast %cst_5 : f32 to vector<2x32xf32>
    %7 = arith.maximumf %5, %6 : vector<2x32xf32>
    %c0_6 = arith.constant 0 : index
    %c0_7 = arith.constant 0 : index
    %8 = vector.load %arg5[%c0_6, %c0_7] : memref<32x32xf32, #tpu.memory_space<vmem>>, vector<32x32xf32>
    %cst_8 = arith.constant dense<0.000000e+00> : vector<2x32xf32>
    %9 = tpu.matmul %7, %8, %cst_8 {dimension_numbers = #tpu.dot_dimension_numbers<[1], [0], [0], [1], [0, 0, 1, 1], [], []>} : vector<2x32xf32>, vector<32x32xf32>, vector<2x32xf32> -> vector<2x32xf32>
    %c0_9 = arith.constant 0 : index
    %c0_10 = arith.constant 0 : index
    %10 = vector.load %arg6[%c0_9, %c0_10] : memref<2x32xf32, #tpu.memory_space<vmem>>, vector<2x32xf32>
    %11 = vector.extract_strided_slice %10 {offsets = [0, 0], sizes = [2, 16], strides = [1, 1]} : vector<2x32xf32> to vector<2x16xf32>
    %c0_11 = arith.constant 0 : index
    %c0_12 = arith.constant 0 : index
    %12 = memref.load %arg1[%c0_11, %c0_12] : memref<4x2xf32, #tpu.memory_space<smem>>
    %13 = vector.broadcast %12 : f32 to vector<2x16xf32>
    %14 = arith.mulf %11, %13 : vector<2x16xf32>
    %c1 = arith.constant 1 : index
    %c0_13 = arith.constant 0 : index
    %15 = memref.load %arg1[%c1, %c0_13] : memref<4x2xf32, #tpu.memory_space<smem>>
    %16 = vector.broadcast %15 : f32 to vector<2x16xf32>
    %17 = arith.addf %14, %16 : vector<2x16xf32>
    %18 = vector.extract_strided_slice %10 {offsets = [0, 16], sizes = [2, 16], strides = [1, 1]} : vector<2x32xf32> to vector<2x16xf32>
    %c0_14 = arith.constant 0 : index
    %c1_15 = arith.constant 1 : index
    %19 = memref.load %arg1[%c0_14, %c1_15] : memref<4x2xf32, #tpu.memory_space<smem>>
    %20 = vector.broadcast %19 : f32 to vector<2x16xf32>
    %21 = arith.mulf %18, %20 : vector<2x16xf32>
    %c1_16 = arith.constant 1 : index
    %c1_17 = arith.constant 1 : index
    %22 = memref.load %arg1[%c1_16, %c1_17] : memref<4x2xf32, #tpu.memory_space<smem>>
    %23 = vector.broadcast %22 : f32 to vector<2x16xf32>
    %24 = arith.addf %21, %23 : vector<2x16xf32>
    %25 = vector.extract_strided_slice %9 {offsets = [0, 0], sizes = [2, 16], strides = [1, 1]} : vector<2x32xf32> to vector<2x16xf32>
    %26 = vector.extract_strided_slice %9 {offsets = [0, 16], sizes = [2, 16], strides = [1, 1]} : vector<2x32xf32> to vector<2x16xf32>
    %27 = arith.mulf %17, %25 : vector<2x16xf32>
    %28 = arith.mulf %24, %26 : vector<2x16xf32>
    %29 = arith.subf %27, %28 : vector<2x16xf32>
    %c2 = arith.constant 2 : index
    %c0_18 = arith.constant 0 : index
    %30 = memref.load %arg1[%c2, %c0_18] : memref<4x2xf32, #tpu.memory_space<smem>>
    %31 = vector.broadcast %30 : f32 to vector<2x16xf32>
    %32 = arith.mulf %29, %31 : vector<2x16xf32>
    %c3 = arith.constant 3 : index
    %c0_19 = arith.constant 0 : index
    %33 = memref.load %arg1[%c3, %c0_19] : memref<4x2xf32, #tpu.memory_space<smem>>
    %34 = vector.broadcast %33 : f32 to vector<2x16xf32>
    %35 = arith.addf %32, %34 : vector<2x16xf32>
    %36 = arith.mulf %17, %26 : vector<2x16xf32>
    %37 = arith.mulf %24, %25 : vector<2x16xf32>
    %38 = arith.addf %36, %37 : vector<2x16xf32>
    %c2_20 = arith.constant 2 : index
    %c1_21 = arith.constant 1 : index
    %39 = memref.load %arg1[%c2_20, %c1_21] : memref<4x2xf32, #tpu.memory_space<smem>>
    %40 = vector.broadcast %39 : f32 to vector<2x16xf32>
    %41 = arith.mulf %38, %40 : vector<2x16xf32>
    %c3_22 = arith.constant 3 : index
    %c1_23 = arith.constant 1 : index
    %42 = memref.load %arg1[%c3_22, %c1_23] : memref<4x2xf32, #tpu.memory_space<smem>>
    %43 = vector.broadcast %42 : f32 to vector<2x16xf32>
    %44 = arith.addf %41, %43 : vector<2x16xf32>
    %45 = tpu.concatenate %35, %44 in 1 : vector<2x16xf32>, vector<2x16xf32> -> vector<2x32xf32>
    %c0_24 = arith.constant 0 : index
    %c0_25 = arith.constant 0 : index
    %46 = vector.load %arg7[%c0_24, %c0_25] : memref<2x32xf32, #tpu.memory_space<vmem>>, vector<2x32xf32>
    tpu.vector_store %arg7[%c0_24, %c0_25], %45 {strides = array<i32>} : memref<2x32xf32, #tpu.memory_space<vmem>>, vector<2x32xf32>,
    return
  }
  func.func @transform_0(%arg0: i32) -> (i32, i32) {
    %c0_i32 = arith.constant 0 : i32
    %c0_i32_0 = arith.constant 0 : i32
    %c0_i32_1 = arith.constant 0 : i32
    return %c0_i32, %c0_i32_0 : i32, i32
  }
  func.func @transform_1(%arg0: i32) -> (i32, i32) {
    %c0_i32 = arith.constant 0 : i32
    %c0_i32_0 = arith.constant 0 : i32
    %c0_i32_1 = arith.constant 0 : i32
    return %c0_i32, %c0_i32_0 : i32, i32
  }
  func.func @transform_2(%arg0: i32) -> (i32, i32) {
    %c0_i32 = arith.constant 0 : i32
    %c0_i32_0 = arith.constant 0 : i32
    %c0_i32_1 = arith.constant 0 : i32
    return %c0_i32, %c0_i32_0 : i32, i32
  }
  func.func @transform_3(%arg0: i32) -> (i32, i32) {
    %c0_i32 = arith.constant 0 : i32
    %c0_i32_0 = arith.constant 0 : i32
    %c0_i32_1 = arith.constant 0 : i32
    return %c0_i32, %c0_i32_0 : i32, i32
  }
  func.func @transform_4(%arg0: i32) -> (i32, i32) {
    %c0_i32 = arith.constant 0 : i32
    %c0_i32_0 = arith.constant 0 : i32
    %c0_i32_1 = arith.constant 0 : i32
    return %c0_i32, %c0_i32_0 : i32, i32
  }
  func.func @transform_5(%arg0: i32) -> (i32, i32) {
    %c0_i32 = arith.constant 0 : i32
    %c0_i32_0 = arith.constant 0 : i32
    %c0_i32_1 = arith.constant 0 : i32
    return %c0_i32, %c0_i32_0 : i32, i32
  }
  func.func @transform_6(%arg0: i32) -> (i32, i32) {
    %c0_i32 = arith.constant 0 : i32
    %c0_i32_0 = arith.constant 0 : i32
    %c0_i32_1 = arith.constant 0 : i32
    return %c0_i32, %c0_i32_0 : i32, i32
  }
}

module attributes {stable_mosaic.version = 11 : i64} {
  func.func @kernel(%arg0: i32, %arg1: i32, %arg2: memref<2x32xf32, #tpu.memory_space<vmem>>, %arg3: memref<32x512xbf16, #tpu.memory_space<vmem>>, %arg4: memref<2x512xbf16, #tpu.memory_space<vmem>>, %arg5: memref<1x1x1xf32, #tpu.memory_space<vmem>>, %arg6: memref<2x512xf32, #tpu.memory_space<vmem>>) attributes {dimension_semantics = [#tpu.dimension_semantics<parallel>, #tpu.dimension_semantics<arbitrary>], iteration_bounds = array<i64: 2, 3>, scalar_prefetch = 0 : i64, scratch_operands = 1 : i64, tpu.core_type = #tpu.core_type<tc>, window_params = [{pipeline_mode = #tpu.pipeline_mode<synchronous>, transform_indices = @transform_0, window_bounds = array<i64: 2, 32>}, {transform_indices = @transform_1, window_bounds = array<i64: 32, 512>}, {transform_indices = @transform_2, window_bounds = array<i64: 2, 512>}, {transform_indices = @transform_3, window_bounds = array<i64: 1, 1, 1>}]} {
    %c0_i32 = arith.constant 0 : i32
    %0 = arith.cmpi eq, %arg1, %c0_i32 : i32
    %1 = arith.extui %0 : i1 to i32
    %c0_i32_0 = arith.constant 0 : i32
    %2 = arith.cmpi ne, %1, %c0_i32_0 : i32
    scf.if %2 {
      %cst_15 = arith.constant 0.000000e+00 : f32
      %39 = vector.broadcast %cst_15 : f32 to vector<2x512xf32>
      %c0_16 = arith.constant 0 : index
      %c0_17 = arith.constant 0 : index
      %40 = vector.load %arg6[%c0_16, %c0_17] : memref<2x512xf32, #tpu.memory_space<vmem>>, vector<2x512xf32>
      tpu.vector_store %arg6[%c0_16, %c0_17], %39 {strides = array<i32>} : memref<2x512xf32, #tpu.memory_space<vmem>>, vector<2x512xf32>,
      %cst_18 = arith.constant 0.000000e+00 : f32
      %41 = vector.broadcast %cst_18 : f32 to vector<1x1x1xf32>
      %c0_19 = arith.constant 0 : index
      %c0_20 = arith.constant 0 : index
      %c0_21 = arith.constant 0 : index
      %42 = vector.load %arg5[%c0_19, %c0_20, %c0_21] : memref<1x1x1xf32, #tpu.memory_space<vmem>>, vector<1x1x1xf32>
      tpu.vector_store %arg5[%c0_19, %c0_20, %c0_21], %41 {strides = array<i32>} : memref<1x1x1xf32, #tpu.memory_space<vmem>>, vector<1x1x1xf32>,
    } else {
    }
    %c0 = arith.constant 0 : index
    %c0_1 = arith.constant 0 : index
    %3 = vector.load %arg2[%c0, %c0_1] : memref<2x32xf32, #tpu.memory_space<vmem>>, vector<2x32xf32>
    %4 = arith.truncf %3 : vector<2x32xf32> to vector<2x32xbf16>
    %c0_2 = arith.constant 0 : index
    %c0_3 = arith.constant 0 : index
    %5 = vector.load %arg3[%c0_2, %c0_3] : memref<32x512xbf16, #tpu.memory_space<vmem>>, vector<32x512xbf16>
    %cst = arith.constant dense<0.000000e+00> : vector<2x512xf32>
    %6 = tpu.matmul %4, %5, %cst {dimension_numbers = #tpu.dot_dimension_numbers<[1], [0], [0], [1], [0, 0, 1, 1], [], []>} : vector<2x32xbf16>, vector<32x512xbf16>, vector<2x512xf32> -> vector<2x512xf32>
    %c0_4 = arith.constant 0 : index
    %c0_5 = arith.constant 0 : index
    %7 = vector.load %arg4[%c0_4, %c0_5] : memref<2x512xbf16, #tpu.memory_space<vmem>>, vector<2x512xbf16>
    %8 = arith.extf %7 : vector<2x512xbf16> to vector<2x512xf32>
    %cst_6 = arith.constant 0.000000e+00 : f32
    %9 = vector.broadcast %cst_6 : f32 to vector<2x512xf32>
    %10 = arith.maximumf %6, %9 : vector<2x512xf32>
    %11 = arith.mulf %8, %6 : vector<2x512xf32>
    %12 = arith.subf %10, %11 : vector<2x512xf32>
    %13 = math.absf %6 : vector<2x512xf32>
    %cst_7 = arith.constant 0.000000e+00 : f32
    %14 = vector.broadcast %cst_7 : f32 to vector<2x512xf32>
    %15 = arith.subf %14, %13 : vector<2x512xf32>
    %16 = math.exp %15 : vector<2x512xf32>
    %cst_8 = arith.constant 1.000000e+00 : f32
    %17 = vector.broadcast %cst_8 : f32 to vector<2x512xf32>
    %18 = arith.addf %17, %16 : vector<2x512xf32>
    %19 = math.log %18 : vector<2x512xf32>
    %20 = arith.addf %12, %19 : vector<2x512xf32>
    %c3_i32 = arith.constant 3 : i32
    %21 = arith.muli %arg0, %c3_i32 : i32
    %22 = arith.addi %21, %arg1 : i32
    %c512_i32 = arith.constant 512 : i32
    %23 = arith.muli %22, %c512_i32 : i32
    %24 = tpu.iota {dimensions = array<i32: 1>} : vector<1x512xi32>
    %25 = vector.broadcast %23 : i32 to vector<1x512xi32>
    %26 = arith.addi %25, %24 : vector<1x512xi32>
    %c2500_i32 = arith.constant 2500 : i32
    %27 = vector.broadcast %c2500_i32 : i32 to vector<1x512xi32>
    %28 = arith.cmpi slt, %26, %27 : vector<1x512xi32>
    %cst_9 = arith.constant 0.000000e+00 : f32
    %29 = vector.shape_cast %28 : vector<1x512xi1> to vector<1x512xi1>
    %30 = vector.broadcast %29 : vector<1x512xi1> to vector<2x512xi1>
    %31 = vector.broadcast %cst_9 : f32 to vector<2x512xf32>
    %32 = arith.select %30, %20, %31 : vector<2x512xi1>, vector<2x512xf32>
    %c0_10 = arith.constant 0 : index
    %c0_11 = arith.constant 0 : index
    %33 = vector.load %arg6[%c0_10, %c0_11] : memref<2x512xf32, #tpu.memory_space<vmem>>, vector<2x512xf32>
    %34 = arith.addf %33, %32 : vector<2x512xf32>
    %c0_12 = arith.constant 0 : index
    %c0_13 = arith.constant 0 : index
    %35 = vector.load %arg6[%c0_12, %c0_13] : memref<2x512xf32, #tpu.memory_space<vmem>>, vector<2x512xf32>
    tpu.vector_store %arg6[%c0_12, %c0_13], %34 {strides = array<i32>} : memref<2x512xf32, #tpu.memory_space<vmem>>, vector<2x512xf32>,
    %c2_i32 = arith.constant 2 : i32
    %36 = arith.cmpi eq, %arg1, %c2_i32 : i32
    %37 = arith.extui %36 : i1 to i32
    %c0_i32_14 = arith.constant 0 : i32
    %38 = arith.cmpi ne, %37, %c0_i32_14 : i32
    scf.if %38 {
      %c0_15 = arith.constant 0 : index
      %c0_16 = arith.constant 0 : index
      %39 = vector.load %arg6[%c0_15, %c0_16] : memref<2x512xf32, #tpu.memory_space<vmem>>, vector<2x512xf32>
      %cst_17 = arith.constant dense<0.000000e+00> : vector<2xf32>
      %40 = vector.multi_reduction <add>, %39, %cst_17 [1] : vector<2x512xf32> to vector<2xf32>
      %41 = vector.shape_cast %40 : vector<2xf32> to vector<2x1xf32>
      %cst_18 = arith.constant dense<0.000000e+00> : vector<1xf32>
      %42 = vector.multi_reduction <add>, %41, %cst_18 [0] : vector<2x1xf32> to vector<1xf32>
      %43 = vector.shape_cast %42 : vector<1xf32> to vector<1x1xf32>
      %44 = vector.shape_cast %43 : vector<1x1xf32> to vector<1x1x1xf32>
      %c0_19 = arith.constant 0 : index
      %c0_20 = arith.constant 0 : index
      %c0_21 = arith.constant 0 : index
      %45 = vector.load %arg5[%c0_19, %c0_20, %c0_21] : memref<1x1x1xf32, #tpu.memory_space<vmem>>, vector<1x1x1xf32>
      tpu.vector_store %arg5[%c0_19, %c0_20, %c0_21], %44 {strides = array<i32>} : memref<1x1x1xf32, #tpu.memory_space<vmem>>, vector<1x1x1xf32>,
    } else {
    }
    return
  }
  func.func @transform_0(%arg0: i32, %arg1: i32) -> (i32, i32) {
    %c0_i32 = arith.constant 0 : i32
    %c0_i32_0 = arith.constant 0 : i32
    %c0_i32_1 = arith.constant 0 : i32
    return %c0_i32, %c0_i32_0 : i32, i32
  }
  func.func @transform_1(%arg0: i32, %arg1: i32) -> (i32, i32) {
    %c3_i32 = arith.constant 3 : i32
    %0 = arith.muli %arg0, %c3_i32 : i32
    %1 = arith.addi %0, %arg1 : i32
    %c0_i32 = arith.constant 0 : i32
    %c0_i32_0 = arith.constant 0 : i32
    return %c0_i32, %1 : i32, i32
  }
  func.func @transform_2(%arg0: i32, %arg1: i32) -> (i32, i32) {
    %c3_i32 = arith.constant 3 : i32
    %0 = arith.muli %arg0, %c3_i32 : i32
    %1 = arith.addi %0, %arg1 : i32
    %c0_i32 = arith.constant 0 : i32
    %c0_i32_0 = arith.constant 0 : i32
    return %c0_i32, %1 : i32, i32
  }
  func.func @transform_3(%arg0: i32, %arg1: i32) -> (i32, i32, i32) {
    %c0_i32 = arith.constant 0 : i32
    %c0_i32_0 = arith.constant 0 : i32
    %c0_i32_1 = arith.constant 0 : i32
    return %arg0, %c0_i32, %c0_i32_0 : i32, i32, i32
  }
}

</mosaic_0001>

<bundles_post_ra>
// kernel: custom-call.2
= control target key start
LH: loop header
LB: loop body
LE: loop exit
PB: predicated region body
PF: predicated region fallthrough
CT: control target
= control target key end

     0   :  { %s6_s0 = inlined_call_operand.vmem [shape: f32[2,16], index: 0, kind: output, shape index: {}]  }

// kernel: answer_filtering_forward.3
= control target key start
LH: loop header
LB: loop body
LE: loop exit
PB: predicated region body
PF: predicated region fallthrough
CT: control target
= control target key end

     0   :  { %s854_s12 = smov 0   ;;  %s856_s13 = smov 0   ;;  %s977_s0 = inlined_call_operand.vmem [shape: f32[2,32], index: 0, kind: input, shape index: {}]   ;;  %s978_s1 = inlined_call_operand.vmem [shape: bf16[32,3072], index: 1, kind: input, shape index: {}]   ;;  %s979_s2 = inlined_call_operand.vmem [shape: bf16[2,3072], index: 2, kind: input, shape index: {}]   ;;  %s980_s3 = inlined_call_operand.vmem [shape: f32[2,1,1], index: 3, kind: output, shape index: {}]  }
   0x1   :  { %s858_s14 = smov 0   ;;  %s860_s15 = smov 0  }
   0x2   :  { %s862_s16 = smov 0   ;;  %s864_s17 = smov 0  }
   0x3   :  { %s866_s18 = smov 0  }
   0x4 LB: > { %s22_s19 = sadd.s32 1, %s821_s16  ;;  %s25_s20 = sadd.s32 1, %s825_s17  ;;  %s829_s18 = sphi %s866_s18, %s13_s18   ;;  %s825_s17 = sphi %s864_s17, %s986_s17   ;;  %s821_s16 = sphi %s862_s16, %s985_s16   ;;  %s817_s15 = sphi %s860_s15, %s984_s15   ;;  %s813_s14 = sphi %s858_s14, %s983_s14   ;;  %s809_s13 = sphi %s856_s13, %s982_s13   ;;  %s805_s12 = sphi %s854_s12, %s981_s12  }
   0x5   : > { %p23_p0 = scmp.ge.s32.totalorder %s22_s19, 3  ;;  %p64_p1 = scmp.ne.s32.totalorder %s809_s13, %s805_s12 }
   0x6   : > { %p65_p2 = scmp.eq.s32.totalorder %s829_s18, 0  ;;  %s50_s21 = smul.u32 3, %s825_s17 }
   0x7   : > { %s988_s19 = smov (%p23_p0, %s22_s19), 0  ;;  %s990_s20 = smov (!%p23_p0, %s25_s20), %s825_s17 }
   0x8   : > { %p27_p3 = scmp.ge.s32.totalorder %s990_s20, 2  ;;  %p66_p4 = por %p65_p2, %p64_p1 }
   0x9   : > { %s51_s22 = sadd.s32 %s821_s16, %s50_s21  ;;  %s57_s26 = sadd.s32 1, %s809_s13 }
   0xa   : > { %s992_s20 = smov (%p27_p3, %s990_s20), 0  ;;  %p664_p6 = scmp.ge.s32.totalorder %s829_s18, 6 }
   0xb   : > { %s52_s23 = smul.u32 3, %s992_s20 }
   0xc   : > { %149 = sbr.rel (%p664_p6) target bundleno = 27 (0x1b), region = 20 }
   0xd   : > { %s53_s24 = sadd.s32 %s52_s23, %s988_s19 }
   0xe   : > { %s54_s25 = ssub.s32 %s51_s22, %s53_s24 }
   0xf   : > { %p55_p5 = scmp.eq.s32.totalorder %s54_s25, 0 }
  0x11   : > { %s905_s27 = scalar_select %p55_p5, %s809_s13, %s57_s26  }
  0x13   : > { %152 = sbr.rel (!%p66_p4) target bundleno = 27 (0x1b), region = 24  ;;  %s154_s28 = sand.u32 (%p66_p4), 1, %s809_s13  }
  0x14   : > { %s686_s29 = sshll.u32 (%p66_p4), %s51_s22, 4  ;;  %s665_s30 = sshll.u32 (%p66_p4), %s154_s28, 6 }
  0x15   : > { %s161_s6 = scalar_lea.vmem (%p66_p4), %s978_s1, %s686_s29  ;;  %s156_s7 = scalar_lea.vmem (%p66_p4), [#allocation3], %s665_s30 }
  0x16   : > { %v174_v0 = vld [vmem:[%s161_s6] sm:$0xff] (%p66_p4)  ;;  %v176_v1 = vld [vmem:[%s161_s6 + $0x8] sm:$0xff] (%p66_p4) }
  0x17   : > { %v178_v2 = vld [vmem:[%s161_s6 + $0x60] sm:$0xff] (%p66_p4)  ;;  %175 = vst [vmem:[%s156_s7] sm:$0xff] (%p66_p4), %v174_v0  ;;  %177 = vst [vmem:[%s156_s7 + $0x8] sm:$0xff] (%p66_p4), %v176_v1  ;;  %v180_v3 = vld [vmem:[%s161_s6 + $0x68] sm:$0xff] (%p66_p4) }
  0x18   : > { %179 = vst [vmem:[%s156_s7 + $0x10] sm:$0xff] (%p66_p4), %v178_v2  ;;  %v182_v4 = vld [vmem:[%s161_s6 + $0xc0] sm:$0xff] (%p66_p4)  ;;  %v184_v5 = vld [vmem:[%s161_s6 + $0xc8] sm:$0xff] (%p66_p4)  ;;  %181 = vst [vmem:[%s156_s7 + $0x18] sm:$0xff] (%p66_p4), %v180_v3 }
  0x19   : > { %183 = vst [vmem:[%s156_s7 + $0x20] sm:$0xff] (%p66_p4), %v182_v4  ;;  %185 = vst [vmem:[%s156_s7 + $0x28] sm:$0xff] (%p66_p4), %v184_v5  ;;  %v186_v6 = vld [vmem:[%s161_s6 + $0x120] sm:$0xff] (%p66_p4)  ;;  %v188_v7 = vld [vmem:[%s161_s6 + $0x128] sm:$0xff] (%p66_p4) }
  0x1a   : > { %187 = vst [vmem:[%s156_s7 + $0x30] sm:$0xff] %v186_v6  ;;  %189 = vst [vmem:[%s156_s7 + $0x38] sm:$0xff] %v188_v7 }
  0x1b PF: > { %p668_p7 = scmp.ge.s32.totalorder %s829_s18, 1  ;;  %p206_p8 = scmp.lt.s32.totalorder %s829_s18, 7 }
  0x1d   : > { %p207_p9 = pnand %p668_p7, %p206_p8 }
  0x1e   : > { %s213_s8 = sand.u32 (!%p207_p9), 1, %s805_s12   ;;  %s243_s9 = smul.u32 (!%p207_p9), 3, %s817_s15 }
  0x1f   : > { %210 = sbr.rel (%p207_p9) target bundleno = 490 (0x1ea), region = 51  ;;  %s669_s10 = sshll.u32 (!%p207_p9), %s213_s8, 6 }
  0x20   : > { %p252_p10 = scmp.lt.s32.totalorder (!%p207_p9), %s817_s15, 1  ;;  %s918_s11 = sadd.s32 (!%p207_p9), %s813_s14, %s243_s9 }
  0x21   : > { %s670_s21 = sshll.u32 (!%p207_p9), %s918_s11, 2  ;;  %s215_s28 = scalar_lea.vmem (!%p207_p9), [#allocation3], %s669_s10 }
  0x22   : > { %p246_p11 = scmp.lt.s32.totalorder (!%p207_p9), %s670_s21, 23  ;;  %p671_p12 = scmp.ne.s32.totalorder (!%p207_p9), %s813_s14, 0 }
  0x26   : > { %s994_s15 = smov (!%p252_p10, %s817_s15), 1  ;;  %s996_s21 = smov (!%p246_p11, %s670_s21), 23 }
  0x27   : > { %s927_s24 = scalar_lea.vmem %s980_s3, %s994_s15  ;;  %s248_s12 = scalar_lea.vmem %s979_s2, %s996_s21  ;;  %vm261_vm0 = vcmask (!%p671_p12), 0   ;;  %v831_v8 = vmov (!%p671_p12), 0.0  }
  0x28   : > { %259 = sbr.rel (%p671_p12) target bundleno = 47 (0x2f), region = 59  ;;  %260 = vst [vmem:[#allocation2] sm:$0xff] (!%p671_p12), %v831_v8  ;;  %262 = vst.msk [vmem:[%s927_s24] sm:$0x1] (!%p671_p12), %vm261_vm0, %v831_v8 }
  0x2f PF: > { %v746_v9 = vld [vmem:[%s215_s28 + $0x4] ss:$16 sps:$4 sm:$0xff]   ;;  %v748_v10 = vld [vmem:[%s215_s28 + $0xc] ss:$16 sps:$4 sm:$0xff]   ;;  %v832_v11 = vmov 0   ;;  %vm313_vm1 = vcmask 261120   ;;  %v414_v22 = vlaneseq }
  0x30   : > { %349 = vmatprep.mubr.bf16.mxu0 %v832_v11  ;;  %390 = vmatprep.mubr.bf16.mxu1 %v832_v11  ;;  %v750_v12 = vld [vmem:[%s215_s28] ss:$16 sps:$4 sm:$0xff]   ;;  %v751_v13 = vld [vmem:[%s215_s28 + $0x8] ss:$16 sps:$4 sm:$0xff]   ;;  %v752_v14 = vld [vmem:[%s215_s28 + $0x24] ss:$16 sps:$4 sm:$0xff]  }
  0x31   : > { %317 = vmatprep.subr.bf16.mxu0 %v746_v9  ;;  %358 = vmatprep.subr.bf16.mxu1 %v748_v10  ;;  %v754_v15 = vld [vmem:[%s215_s28 + $0x2c] ss:$16 sps:$4 sm:$0xff]   ;;  %v756_v16 = vld [vmem:[%s215_s28 + $0x20] ss:$16 sps:$4 sm:$0xff]   ;;  %v757_v17 = vld [vmem:[%s215_s28 + $0x28] ss:$16 sps:$4 sm:$0xff]  }
  0x32   : > { %318 = vmatpush1.bf16.msra.mxu0 %v750_v12  ;;  %359 = vmatpush1.bf16.msra.mxu1 %v751_v13  ;;  %v263_v18 = vld [vmem:[%s977_s0] sm:$0x3]  ;;  %v833_v20 = vmov 1983009808   ;;  %v415_v24 = vshrl.u32 %v414_v22, 7  ;;  %v490_v11 = vand.u32 127, %v414_v22 }
  0x33   : > { %319 = vmatprep.subr.bf16.mxu0 %v752_v14  ;;  %360 = vmatprep.subr.bf16.mxu1 %v754_v15  ;;  %v264_v19 = vpack.c.bf16 %v263_v18, %v263_v18  ;;  %v412_v21 = vunpack.c.l.s4 %v833_v20  ;;  %v399_v35 = vld [vmem:[%s248_s12] sm:$0xf]  ;;  %s682_s5 = sshll.u32 %s918_s11, 9  ;;  %p683_p13 = scmp.ne.s32.totalorder %s813_s14, 2 }
  0x34   : > { %v400_v47 = vunpack.c.l.bf16 %v399_v35  ;;  %v492_v12 = vadd.s32 256, %v490_v11  ;;  %v494_v13 = vstv %s682_s5  ;;  %v491_v14 = vadd.s32 128, %v490_v11 }
  0x35   : > { %v413_v23 = vunpack.c.0.s8 %v412_v21  ;;  %v493_v15 = vadd.s32 384, %v490_v11  ;;  %vm567_vm6 = vcmask (!%p683_p13), 1041408   ;;  %vm584_vm7 = vcmask (!%p683_p13), 0  }
  0x36   : > { %320 = vmatpush1.bf16.msra.mxu0 %v756_v16  ;;  %361 = vmatpush1.bf16.msra.mxu1 %v757_v17  ;;  %v495_v16 = vadd.s32 %v494_v13, %v490_v11  ;;  %v497_v18 = vadd.s32 %v494_v13, %v492_v12  ;;  %v496_v21 = vadd.s32 %v494_v13, %v491_v14 }
  0x37   : > { %v938_v29 = vsub.s32 %v413_v23, %v415_v24  ;;  %v498_v24 = vadd.s32 %v494_v13, %v493_v15 }
  0x38   : > { %vm499_vm2 = vcmp.lt.s32.totalorder %v495_v16, 2500  ;;  %vm501_vm3 = vcmp.lt.s32.totalorder %v497_v18, 2500  ;;  %vm500_vm4 = vcmp.lt.s32.totalorder %v496_v21, 2500 }
  0x39   : > { %680 = vmatmul.mubr.msk.bf16.vlgmr.msra.gmra.mrb[0].mxu0 %vm313_vm1, %v264_v19  ;;  %681 = vmatmul.mubr.msk.bf16.vlgmr.msra.gmra.mrb[0].mxu1 %vm313_vm1, %v264_v19  ;;  %vm502_vm5 = vcmp.lt.s32.totalorder %v498_v24, 2500 }
 0x10c   : > { %v351_v25 = vpop.f32.mrb[0].mxu0  ;;  %v392_v26 = vpop.f32.mrb[0].mxu1 }
 0x10d   : > { %v454_v27 = vand.u32 2147483647, %v351_v25  ;;  %v456_v28 = vand.u32 2147483647, %v392_v26  ;;  %v353_v30 = vpop.f32.mrb[1].mxu0  ;;  %v394_v31 = vpop.f32.mrb[1].mxu1 }
 0x10e   : > { %v409_v34 = vcombine.low %v351_v25, %v353_v30  ;;  %v355_v36 = vpop.f32.mrb[2].mxu0  ;;  %v396_v37 = vpop.f32.mrb[2].mxu1  ;;  %v455_v38 = vand.u32 2147483647, %v353_v30  ;;  %v410_v39 = vcombine.low %v392_v26, %v394_v31  ;;  %v457_v40 = vand.u32 2147483647, %v394_v31 }
 0x10f   : > { %v458_v32 = vsub.f32 0.0, %v454_v27  ;;  %v460_v33 = vsub.f32 0.0, %v456_v28  ;;  %v356_v41 = vpop.f32.mrb[3].mxu0  ;;  %v397_v45 = vpop.f32.mrb[3].mxu1  ;;  %v401_v54 = vmax.f32 %v351_v25, 0.0  ;;  %v403_v57 = vmax.f32 %v392_v26, 0.0 }
 0x110   : > { %v417_v44 = vrot.slane %v409_v34, %v938_v29  ;;  %v459_v46 = vsub.f32 0.0, %v455_v38  ;;  %v424_v48 = vrot.slane %v410_v39, %v938_v29  ;;  %v461_v49 = vsub.f32 0.0, %v457_v40  ;;  %v515_v41 = vld [vmem:[#allocation2] sm:$0xff] }
 0x111   : > { %v462_v42 = vmul.f32 1.442695, %v458_v32  ;;  %v466_v43 = vmul.f32 1.442695, %v460_v33  ;;  %v402_v58 = vmax.f32 %v353_v30, 0.0  ;;  %v404_v62 = vmax.f32 %v394_v31, 0.0 }
 0x112   : > { %v464_v50 = vmul.f32 1.442695, %v459_v46  ;;  %v425_v51 = vcombine.low %v417_v44, %v424_v48  ;;  %v468_v52 = vmul.f32 1.442695, %v461_v49 }
 0x113   : > { %758 = vpow2.f32 %v462_v42 }
 0x114   : > { %760 = vpow2.f32 %v466_v43  ;;  %v427_v53 = vmul.f32 %v425_v51, %v400_v47 }
 0x115   : > { %762 = vpow2.f32 %v464_v50 }
 0x116   : > { %764 = vpow2.f32 %v468_v52  ;;  %v429_v55 = vcombine.high %v427_v53, %v427_v53  ;;  %v436_v56 = vrot.slane %v427_v53, %v938_v29 }
 0x118   : > { %v443_v59 = vrot.slane %v429_v55, %v938_v29  ;;  %v444_v60 = vcombine.high %v436_v56, %v436_v56  ;;  %v450_v61 = vsub.f32 %v401_v54, %v436_v56 }
 0x11a   : > { %v445_v63 = vcombine.high %v443_v59, %v443_v59  ;;  %v451_v0 = vsub.f32 %v402_v58, %v444_v60  ;;  %v452_v1 = vsub.f32 %v403_v57, %v443_v59 }
 0x11c   : > { %v453_v5 = vsub.f32 %v404_v62, %v445_v63 }
 0x11d   : > { %v759_v2 = vpop.eup %758 }
 0x11e   : > { %v761_v3 = vpop.eup %760  ;;  %v470_v4 = vadd.f32 1.0, %v759_v2 }
 0x11f   : > { %v472_v6 = vadd.f32 1.0, %v761_v3  ;;  %v763_v7 = vpop.eup %762 }
 0x120   : > { %766 = vlog2.f32 %v470_v4  ;;  %v765_v8 = vpop.eup %764  ;;  %v471_v9 = vadd.f32 1.0, %v763_v7 }
 0x121   : > { %768 = vlog2.f32 %v472_v6  ;;  %v473_v10 = vadd.f32 1.0, %v765_v8 }
 0x122   : > { %770 = vlog2.f32 %v471_v9 }
 0x123   : > { %772 = vlog2.f32 %v473_v10 }
 0x12a   : > { %v767_v17 = vpop.eup %766 }
 0x12b   : > { %v769_v19 = vpop.eup %768  ;;  %v475_v20 = vmul.f32 0.6931472, %v767_v17 }
 0x12c   : > { %v479_v23 = vmul.f32 0.6931472, %v769_v19  ;;  %v771_v25 = vpop.eup %770 }
 0x12d   : > { %v482_v26 = vadd.f32 %v475_v20, %v450_v61  ;;  %v773_v27 = vpop.eup %772  ;;  %v477_v22 = vmul.f32 0.6931472, %v771_v25 }
 0x12e   : > { %v484_v28 = vadd.f32 %v479_v23, %v452_v1  ;;  %v481_v30 = vmul.f32 0.6931472, %v773_v27 }
 0x12f   : > { %v483_v31 = vadd.f32 %v477_v22, %v451_v0  ;;  %v511_v32 = vsel %vm499_vm2, %v482_v26, 0.0 }
 0x130   : > { %v485_v33 = vadd.f32 %v481_v30, %v453_v5  ;;  %v513_v34 = vsel %vm501_vm3, %v484_v28, 0.0 }
 0x131   : > { %v512_v35 = vsel %vm500_vm4, %v483_v31, 0.0 }
 0x132   : > { %v514_v36 = vsel %vm502_vm5, %v485_v33, 0.0  ;;  %v520_v37 = vcombine.low %v511_v32, %v512_v35 }
 0x133   : > { %v521_v38 = vcombine.low %v513_v34, %v514_v36 }
 0x134   : > { %v528_v39 = vrot.slane %v520_v37, %v938_v29 }
 0x135   : > { %v535_v40 = vrot.slane %v521_v38, %v938_v29  ;;  %543 = sbr.rel (%p683_p13) target bundleno = 490 (0x1ea), region = 63 }
 0x137   : > { %v536_v42 = vcombine.low %v528_v39, %v535_v40 }
 0x139   : > { %v538_v43 = vadd.f32 %v536_v42, %v515_v41 }
 0x13b   : > { %539 = vst [vmem:[#allocation2] sm:$0xff] %v538_v43 }
 0x142   : > { %v544_v44 = vld [vmem:[#allocation2] sm:$0xff] }
 0x143   : > { %v546_v45 = vcombine.high %v544_v44, %v544_v44  ;;  %v553_v46 = vrot.slane %v544_v44, %v938_v29 }
 0x145   : > { %v560_v47 = vrot.slane %v546_v45, %v938_v29  ;;  %v561_v48 = vcombine.high %v553_v46, %v553_v46  ;;  %v568_v49 = vsel %vm567_vm6, %v553_v46, 0.0 }
 0x147   : > { %v562_v50 = vcombine.high %v560_v47, %v560_v47  ;;  %v569_v51 = vsel %vm567_vm6, %v561_v48, 0.0  ;;  %v571_v52 = vsel %vm567_vm6, %v560_v47, 0.0 }
 0x148   : > { %v570_v53 = vadd.f32 %v569_v51, %v568_v49 }
 0x149   : > { %v573_v54 = vsel %vm567_vm6, %v562_v50, 0.0 }
 0x14a   : > { %v572_v55 = vadd.f32 %v571_v52, %v570_v53 }
 0x14c   : > { %v574_v56 = vadd.f32 %v573_v54, %v572_v55 }
 0x14e   : > { %575 = vadd.xlane.f32.xlu0 %v574_v56 }
 0x1db   : > { %v576_v57 = vpop.xlane.xlu0 %575 }
 0x1dc   : > { %v577_v58 = vsel %vm567_vm6, %v576_v57, 0.0 }
 0x1dd   : > { %v578_v59 = vrot.slane %v577_v58, 4 }
 0x1df   : > { %v579_v60 = vadd.f32 %v578_v59, %v577_v58 }
 0x1e1   : > { %v580_v61 = vrot.slane %v579_v60, 2 }
 0x1e3   : > { %v581_v62 = vadd.f32 %v580_v61, %v579_v60 }
 0x1e5   : > { %v582_v63 = vrot.slane %v581_v62, 1 }
 0x1e7   : > { %v583_v29 = vadd.f32 %v582_v63, %v581_v62 }
 0x1e9   : > { %585 = vst.msk [vmem:[%s927_s24] sm:$0x1] %vm584_vm7, %v583_v29 }
 0x1ea PF: > { %s13_s18 = sadd.s32 1, %s829_s18   ;;  %s981_s12 = smov %s809_s13 }
 0x1eb   : > { %p10_p0 = scmp.ge.s32.totalorder %s13_s18, 8   ;;  %s982_s13 = smov %s905_s27 }
 0x1ec   : > { %s983_s14 = smov %s821_s16  ;;  %s984_s15 = smov %s825_s17 }
 0x1ed   : > { %s985_s16 = smov %s988_s19  ;;  %s986_s17 = smov %s992_s20 }
 0x1ee   :  { %12 = sbr.rel (!%p10_p0) target bundleno = 4 (0x4), region = 101 }

// kernel: answer_filtering_forward.2
= control target key start
LH: loop header
LB: loop body
LE: loop exit
PB: predicated region body
PF: predicated region fallthrough
CT: control target
= control target key end

     0   :  { %11 = vsyncpa [#allocation3], 0  ;;  %s415_s0 = inlined_call_operand.vmem [shape: f32[4,2], index: 0, kind: input, shape index: {}]   ;;  %s416_s1 = inlined_call_operand.vmem [shape: f32[2,32], index: 1, kind: input, shape index: {}]   ;;  %s417_s2 = inlined_call_operand.vmem [shape: f32[32,32], index: 2, kind: input, shape index: {}]   ;;  %s418_s3 = inlined_call_operand.vmem [shape: f32[1,32], index: 3, kind: input, shape index: {}]   ;;  %s419_s4 = inlined_call_operand.vmem [shape: f32[32,32], index: 4, kind: input, shape index: {}]   ;;  %s420_s5 = inlined_call_operand.vmem [shape: f32[2,32], index: 5, kind: input, shape index: {}]   ;;  %s421_s6 = inlined_call_operand.vmem [shape: f32[2,32], index: 6, kind: output, shape index: {}]  }
   0x1   :  { %s18_s23 = sshll.u32 %s415_s0, 4  ;;  %s19_s23 = int_to_ptr.vmem [resolvable:$true] %s18_s23 }
   0x2   :  { %s319_s24 = scalar_lea.vmem %s19_s23, 64  ;;  %p324_p1 = scmp.lt.s32.totalorder %s19_s23, %s19_s23 }
   0x3   :  { %p320_p0 = scmp.ne.s32.totalorder %s19_s23, %s319_s24  ;;  %p325_p2 = scmp.lt.s32.totalorder %s319_s24, %s319_s24 }
   0x5   :  { %p326_p3 = por %p325_p2, %p324_p1 }
   0x7   :  { %p327_p4 = pnand %p326_p3, %p320_p0 }
   0x9   :  { %330 = shalt.err (!%p327_p4)
}
   0xa   :  { %s333_s25 = smov [#allocation2]  }
   0xb   :  { %21 = dma.vmem_to_smem %s19_s23, 64, %s333_s25, [#allocation3]  }
   0xc   :  { %331 = dma.done.wait [#allocation3], 64  }
   0xd   :  { %332 = vsyncadd [#allocation3], 4294967232 }
   0xe   :  { %35 = sfence }
   0xf   :  { %v37_v0 = vld [vmem:[%s417_s2] sm:$0xff]  ;;  %v38_v1 = vld [vmem:[%s417_s2 + $0x8] sm:$0xff]  ;;  %v39_v2 = vld [vmem:[%s417_s2 + $0x10] sm:$0xff]  ;;  %v334_v3 = vmov 0.0|0.0   ;;  %vm335_vm0 = vmmov 0   ;;  %v336_v6 = vmov 0.0  }
  0x10   :  { %301 = vmatprep.subr.bf16.mxu0 %v334_v3  ;;  %v302_v4 = vpack.c.bf16 %v38_v1, %v37_v0  ;;  %v40_v5 = vld [vmem:[%s417_s2 + $0x18] sm:$0xff]  ;;  %287 = vmatprep.mubr.msk.f32.mxu0 %vm335_vm0, %v336_v6  ;;  %v123_v7 = vld [vmem:[%s419_s4] sm:$0xff]  ;;  %v124_v8 = vld [vmem:[%s419_s4 + $0x8] sm:$0xff]  ;;  %vm48_vm1 = vcmask 261120   ;;  %s338_s20 = smov 112   ;;  %s263_s21 = sld [smem:[#allocation2 + $0x1]] }
  0x11   :  { %307 = vmatprep.subr.bf16.mxu1 %v334_v3  ;;  %298 = vmatprep.mubr.msk.f32.mxu1 %vm335_vm0, %v336_v6  ;;  %v305_v9 = vpack.c.bf16 %v40_v5, %v39_v2  ;;  %v308_v10 = vpack.c.bf16 %v124_v8, %v123_v7  ;;  %v36_v11 = vld [vmem:[%s416_s1] sm:$0x3]  ;;  %v125_v12 = vld [vmem:[%s419_s4 + $0x10] sm:$0xff]  ;;  %v126_v13 = vld [vmem:[%s419_s4 + $0x18] sm:$0xff]  ;;  %s337_s1 = smov 16   ;;  %s264_s4 = sld [smem:[#allocation2 + $0x81]] }
  0x12   :  { %303 = vmatpush3.bf16.msra.mxu0 %v302_v4  ;;  %v311_v14 = vpack.c.bf16 %v126_v13, %v125_v12  ;;  %v259_v15 = vld [vmem:[%s418_s3] ss:$0 sm:$0xff]  ;;  %s201_s3 = sld [smem:[#allocation2]]  ;;  %s267_s25 = sld [smem:[#allocation2 + $0x101]]  ;;  %vm250_vm2 = vcmask 130048   ;;  %vm252_vm3 = vcmask 254976  }
  0x13   :  { %304 = vmatprep.subr.bf16.mxu0 %v334_v3  ;;  %309 = vmatpush3.bf16.msra.mxu1 %v308_v10  ;;  %v200_v22 = vld [vmem:[%s420_s5] sm:$0x3]  ;;  %s262_s24 = sld [smem:[#allocation2 + $0x80]]  ;;  %s268_s26 = sld [smem:[#allocation2 + $0x181]] }
  0x14   :  { %310 = vmatprep.subr.bf16.mxu1 %v334_v3  ;;  %s265_s5 = sld [smem:[#allocation2 + $0x100]] }
  0x15   :  { %s266_s27 = sld [smem:[#allocation2 + $0x180]] }
  0x16   :  { %306 = vmatpush3.bf16.msra.mxu0 %v305_v9  ;;  %v208_v23 = vstv %s263_s21 }
  0x17   :  { %312 = vmatpush3.bf16.msra.mxu1 %v311_v14  ;;  %v209_v24 = vmul.f32 %v208_v23, %v200_v22  ;;  %v211_v25 = vstv %s264_s4 }
  0x18   :  { %v202_v30 = vstv %s201_s3  ;;  %v241_v36 = vstv %s267_s25 }
  0x19   :  { %288 = vmatmul.mubr.msk.f32.vlgmr.msra.gmra.mrb[0].mxu0 %vm48_vm1, %v36_v11  ;;  %v212_v26 = vadd.f32 %v211_v25, %v209_v24  ;;  %v203_v31 = vmul.f32 %v202_v30, %v200_v22  ;;  %v205_v32 = vstv %s262_s24  ;;  %v244_v39 = vstv %s268_s26 }
  0x1a   :  { %v221_v45 = vstv %s265_s5 }
  0x1b   :  { %v206_v34 = vadd.f32 %v205_v32, %v203_v31  ;;  %v224_v47 = vstv %s266_s27 }
  0xec   :  { %v118_v16 = vpop.f32.mrb[0].mxu0 }
  0xed   :  { %v119_v17 = vadd.f32 %v259_v15, %v118_v16  ;;  %v289_v18 = vpop.f32.mrb[1].mxu0 }
  0xef   :  { %v122_v19 = vmax.f32 %v119_v17, 0.0 }
  0xf1   :  { %299 = vmatmul.mubr.msk.f32.vlgmr.msra.gmra.mrb[0].mxu1 %vm48_vm1, %v122_v19 }
 0x1c4   :  { %v196_v20 = vpop.f32.mrb[0].mxu1 }
 0x1c5   :  { %231 = vrot.lane.b32.xlu0 %v196_v20, %s337_s1  ;;  %v300_v21 = vpop.f32.mrb[1].mxu1  ;;  %v214_v29 = vmul.f32 %v212_v26, %v196_v20  ;;  %v213_v43 = vmul.f32 %v206_v34, %v196_v20 }
 0x1c9   :  { %227 = vrot.lane.b32.xlu0 %v196_v20, %s338_s20 }
 0x237   :  { %v232_v27 = vpop.permute.xlu0 %231 }
 0x238   :  { %v234_v28 = vmul.f32 %v232_v27, %v212_v26 }
 0x23a   :  { %236 = vrot.lane.b32.xlu1 %v234_v28, %s338_s20 }
 0x23b   :  { %v228_v33 = vpop.permute.xlu0 %227 }
 0x23c   :  { %v230_v35 = vmul.f32 %v228_v33, %v206_v34 }
 0x23e   :  { %216 = vrot.lane.b32.xlu1 %v214_v29, %s338_s20 }
 0x2ac   :  { %v237_v37 = vpop.permute.xlu1 %236 }
 0x2ad   :  { %v239_v38 = vadd.f32 %v237_v37, %v230_v35 }
 0x2af   :  { %v242_v40 = vmul.f32 %v241_v36, %v239_v38 }
 0x2b0   :  { %v217_v42 = vpop.permute.xlu1 %216 }
 0x2b1   :  { %v245_v41 = vadd.f32 %v244_v39, %v242_v40  ;;  %v219_v44 = vsub.f32 %v213_v43, %v217_v42 }
 0x2b3   :  { %247 = vrot.lane.b32.xlu0 %v245_v41, %s337_s1  ;;  %v222_v46 = vmul.f32 %v221_v45, %v219_v44 }
 0x2b5   :  { %v225_v48 = vadd.f32 %v224_v47, %v222_v46 }
 0x325   :  { %v248_v49 = vpop.permute.xlu0 %247 }
 0x326   :  { %v251_v50 = vsel %vm250_vm2, %v225_v48, %v248_v49 }
 0x327   :  { %253 = vst.msk [vmem:[%s421_s6] sm:$0x3] %vm252_vm3, %v251_v50 }
 0x328   :  { %258 = vsyncpa [#allocation3], 1 }

</bundles_post_ra>
